<compile_context>
chip_gen: v6e
topology: v6e:2x2x1
jax: 0.10.0
libtpu: 0.0.40
codegen_flags: <defaults>
</compile_context>

<pallas_src>
import jax
import jax.numpy as jnp
from jax.experimental import pallas as pl
from jax.experimental.pallas import tpu as pltpu


def _round_up(n, m):
    return ((n + m - 1) // m) * m


def mlp_kernel(xT_ref, w1_ref, b1_ref, w2_ref, b2_ref, w3_ref, b3_ref, o_ref):
    # Transposed layout: xT is (10, TB); weights are (out, in); batch on lanes.
    xT = xT_ref[...]                                        # (10, TB)

    h1 = jnp.dot(w1_ref[...], xT, preferred_element_type=jnp.float32)
    h1 = jnp.maximum(h1 + b1_ref[...], 0.0)                 # (32, TB) f32, full lanes

    h2 = jnp.dot(w2_ref[...], h1.astype(w2_ref.dtype),
                 preferred_element_type=jnp.float32)
    h2 = jnp.maximum(h2 + b2_ref[...], 0.0)                 # (16, TB) f32, full lanes

    logits = jnp.dot(w3_ref[...], h2.astype(w3_ref.dtype),
                     preferred_element_type=jnp.float32) + b3_ref[...]   # (1, TB)
    o_ref[...] = jax.nn.sigmoid(logits)                     # lane-dense store


def metrics_model_forward(x, params, *, compute_dtype=jnp.float32, tb_max=2048):
    """x: (B, 10) -> (B, 1). params in PyTorch layout: w (out, in), b (out,)."""
    w1, b1, w2, b2, w3, b3 = params
    B, F = x.shape
    assert F == 10

    # Batch tile rides the lane axis: multiple of 128, large for pipelining,
    # tiny in VMEM (a (10, 2048) f32 tile is ~128 KiB) so the default scoped
    # VMEM limit is fine on v5e/v6e/v7x.
    Bp = _round_up(B, 128)
    tb = min(_round_up(tb_max, 128), Bp)
    Bp = _round_up(Bp, tb)
    n_tiles = Bp // tb

    # Feature-major input: transpose and zero-pad the batch (lane) axis.
    xT = jnp.transpose(x).astype(compute_dtype)             # (10, B)
    xT = jnp.pad(xT, ((0, 0), (0, Bp - B)))                 # (10, Bp)

    w1c = w1.astype(compute_dtype)
    w2c = w2.astype(compute_dtype)
    w3c = w3.astype(compute_dtype)
    b1c = b1.reshape(-1, 1).astype(jnp.float32)             # (32, 1)
    b2c = b2.reshape(-1, 1).astype(jnp.float32)             # (16, 1)
    b3c = b3.reshape(-1, 1).astype(jnp.float32)             # (1, 1)

    # Weights/biases: full-array blocks with constant index_map -> VMEM-resident
    # across all grid steps (fetched once, ~3.5 KB total).
    def resident(shape):
        return pl.BlockSpec(shape, lambda i: (0,) * len(shape))

    outT = pl.pallas_call(
        mlp_kernel,
        out_shape=jax.ShapeDtypeStruct((1, Bp), jnp.float32),
        grid=(n_tiles,),
        in_specs=[
            pl.BlockSpec((10, tb), lambda i: (0, i)),        # x tile, pipelined
            resident(w1c.shape), resident(b1c.shape),
            resident(w2c.shape), resident(b2c.shape),
            resident(w3c.shape), resident(b3c.shape),
        ],
        out_specs=pl.BlockSpec((1, tb), lambda i: (0, i)),   # lane-dense output
        compiler_params=pltpu.CompilerParams(
            dimension_semantics=("parallel",)),              # megacore on v7x
    )(xT, w1c, b1c, w2c, b2c, w3c, b3c)

    return jnp.transpose(outT[:, :B])                        # (B, 1)


def init_params(key):
    # PyTorch nn.Linear default init: U(-1/sqrt(fan_in), 1/sqrt(fan_in)),
    # weights stored (out_features, in_features) like PyTorch.
    def linear(key, fan_in, fan_out):
        kw, kb = jax.random.split(key)
        bound = 1.0 / jnp.sqrt(fan_in)
        w = jax.random.uniform(kw, (fan_out, fan_in), jnp.float32, -bound, bound)
        b = jax.random.uniform(kb, (fan_out,), jnp.float32, -bound, bound)
        return w, b

    k1, k2, k3 = jax.random.split(key, 3)
    w1, b1 = linear(k1, 10, 32)
    w2, b2 = linear(k2, 32, 16)
    w3, b3 = linear(k3, 16, 1)
    return (w1, b1, w2, b2, w3, b3)


def reference_forward(x, params):
    w1, b1, w2, b2, w3, b3 = params
    h1 = jax.nn.relu(x @ w1.T + b1)
    h2 = jax.nn.relu(h1 @ w2.T + b2)
    return jax.nn.sigmoid(h2 @ w3.T + b3)


if __name__ == "__main__":
    key = jax.random.PRNGKey(0)
    kx1, kx2, kp = jax.random.split(key, 3)
    params = init_params(kp)

    # 1) Small-shape check consistent with the module (batch=8, features=10).
    B = 8
    x = jax.random.normal(kx1, (B, 10), jnp.float32)
    out = jax.block_until_ready(metrics_model_forward(x, params))
    ref = reference_forward(x, params)
    assert out.shape == (B, 1)
    assert jnp.allclose(out, ref, atol=1e-5, rtol=1e-5), "f32 mismatch vs reference"

    # 2) Multi-tile grid path (ragged batch -> padded, 3 pipelined grid steps).
    B2 = 300
    x2 = jax.random.normal(kx2, (B2, 10), jnp.float32)
    out2 = jax.block_until_ready(metrics_model_forward(x2, params, tb_max=128))
    ref2 = reference_forward(x2, params)
    assert out2.shape == (B2, 1)
    assert jnp.allclose(out2, ref2, atol=1e-5, rtol=1e-5), "tiled mismatch vs reference"

    # 3) bf16 input/weight path (halves HBM bytes on the dominant x stream).
    out_bf16 = jax.block_until_ready(
        metrics_model_forward(x2, params, compute_dtype=jnp.bfloat16, tb_max=128))
    assert out_bf16.shape == (B2, 1)
    assert jnp.allclose(out_bf16, ref2, atol=5e-2), "bf16 mismatch vs reference"

    print("KERNEL_OK")
</pallas_src>

<mosaic_0001>
module attributes {stable_mosaic.version = 11 : i64} {
  func.func @mlp_kernel(%arg0: i32, %arg1: memref<10x128xf32, #tpu.memory_space<vmem>>, %arg2: memref<32x10xf32, #tpu.memory_space<vmem>>, %arg3: memref<32x1xf32, #tpu.memory_space<vmem>>, %arg4: memref<16x32xf32, #tpu.memory_space<vmem>>, %arg5: memref<16x1xf32, #tpu.memory_space<vmem>>, %arg6: memref<1x16xf32, #tpu.memory_space<vmem>>, %arg7: memref<1x1xf32, #tpu.memory_space<vmem>>, %arg8: memref<1x128xf32, #tpu.memory_space<vmem>>) attributes {dimension_semantics = [#tpu.dimension_semantics<parallel>], iteration_bounds = array<i64: 1>, scalar_prefetch = 0 : i64, scratch_operands = 0 : i64, tpu.core_type = #tpu.core_type<tc>, window_params = [{transform_indices = @transform_0, window_bounds = array<i64: 10, 128>}, {pipeline_mode = #tpu.pipeline_mode<synchronous>, transform_indices = @transform_1, window_bounds = array<i64: 32, 10>}, {pipeline_mode = #tpu.pipeline_mode<synchronous>, transform_indices = @transform_2, window_bounds = array<i64: 32, 1>}, {pipeline_mode = #tpu.pipeline_mode<synchronous>, transform_indices = @transform_3, window_bounds = array<i64: 16, 32>}, {pipeline_mode = #tpu.pipeline_mode<synchronous>, transform_indices = @transform_4, window_bounds = array<i64: 16, 1>}, {pipeline_mode = #tpu.pipeline_mode<synchronous>, transform_indices = @transform_5, window_bounds = array<i64: 1, 16>}, {pipeline_mode = #tpu.pipeline_mode<synchronous>, transform_indices = @transform_6, window_bounds = array<i64: 1, 1>}, {transform_indices = @transform_7, window_bounds = array<i64: 1, 128>}]} {
    %c0 = arith.constant 0 : index
    %c0_0 = arith.constant 0 : index
    %0 = vector.load %arg1[%c0, %c0_0] : memref<10x128xf32, #tpu.memory_space<vmem>>, vector<10x128xf32>
    %c0_1 = arith.constant 0 : index
    %c0_2 = arith.constant 0 : index
    %1 = vector.load %arg2[%c0_1, %c0_2] : memref<32x10xf32, #tpu.memory_space<vmem>>, vector<32x10xf32>
    %cst = arith.constant dense<0.000000e+00> : vector<32x128xf32>
    %2 = tpu.matmul %1, %0, %cst {dimension_numbers = #tpu.dot_dimension_numbers<[1], [0], [0], [1], [0, 0, 1, 1], [], []>} : vector<32x10xf32>, vector<10x128xf32>, vector<32x128xf32> -> vector<32x128xf32>
    %c0_3 = arith.constant 0 : index
    %c0_4 = arith.constant 0 : index
    %3 = vector.load %arg3[%c0_3, %c0_4] : memref<32x1xf32, #tpu.memory_space<vmem>>, vector<32x1xf32>
    %4 = vector.broadcast %3 : vector<32x1xf32> to vector<32x128xf32>
    %5 = arith.addf %2, %4 : vector<32x128xf32>
    %cst_5 = arith.constant 0.000000e+00 : f32
    %6 = vector.broadcast %cst_5 : f32 to vector<32x128xf32>
    %7 = arith.maximumf %5, %6 : vector<32x128xf32>
    %c0_6 = arith.constant 0 : index
    %c0_7 = arith.constant 0 : index
    %8 = vector.load %arg4[%c0_6, %c0_7] : memref<16x32xf32, #tpu.memory_space<vmem>>, vector<16x32xf32>
    %cst_8 = arith.constant dense<0.000000e+00> : vector<16x128xf32>
    %9 = tpu.matmul %8, %7, %cst_8 {dimension_numbers = #tpu.dot_dimension_numbers<[1], [0], [0], [1], [0, 0, 1, 1], [], []>} : vector<16x32xf32>, vector<32x128xf32>, vector<16x128xf32> -> vector<16x128xf32>
    %c0_9 = arith.constant 0 : index
    %c0_10 = arith.constant 0 : index
    %10 = vector.load %arg5[%c0_9, %c0_10] : memref<16x1xf32, #tpu.memory_space<vmem>>, vector<16x1xf32>
    %11 = vector.broadcast %10 : vector<16x1xf32> to vector<16x128xf32>
    %12 = arith.addf %9, %11 : vector<16x128xf32>
    %cst_11 = arith.constant 0.000000e+00 : f32
    %13 = vector.broadcast %cst_11 : f32 to vector<16x128xf32>
    %14 = arith.maximumf %12, %13 : vector<16x128xf32>
    %c0_12 = arith.constant 0 : index
    %c0_13 = arith.constant 0 : index
    %15 = vector.load %arg6[%c0_12, %c0_13] : memref<1x16xf32, #tpu.memory_space<vmem>>, vector<1x16xf32>
    %cst_14 = arith.constant dense<0.000000e+00> : vector<1x128xf32>
    %16 = tpu.matmul %15, %14, %cst_14 {dimension_numbers = #tpu.dot_dimension_numbers<[1], [0], [0], [1], [0, 0, 1, 1], [], []>} : vector<1x16xf32>, vector<16x128xf32>, vector<1x128xf32> -> vector<1x128xf32>
    %c0_15 = arith.constant 0 : index
    %c0_16 = arith.constant 0 : index
    %17 = vector.load %arg7[%c0_15, %c0_16] : memref<1x1xf32, #tpu.memory_space<vmem>>, vector<1x1xf32>
    %18 = vector.broadcast %17 : vector<1x1xf32> to vector<1x128xf32>
    %19 = arith.addf %16, %18 : vector<1x128xf32>
    %20 = arith.negf %19 : vector<1x128xf32>
    %21 = math.exp %20 : vector<1x128xf32>
    %cst_17 = arith.constant 1.000000e+00 : f32
    %22 = vector.broadcast %cst_17 : f32 to vector<1x128xf32>
    %23 = arith.addf %22, %21 : vector<1x128xf32>
    %24 = arith.divf %22, %23 : vector<1x128xf32>
    %c0_18 = arith.constant 0 : index
    %c0_19 = arith.constant 0 : index
    %25 = vector.load %arg8[%c0_18, %c0_19] : memref<1x128xf32, #tpu.memory_space<vmem>>, vector<1x128xf32>
    tpu.vector_store %arg8[%c0_18, %c0_19], %24 {strides = array<i32>} : memref<1x128xf32, #tpu.memory_space<vmem>>, vector<1x128xf32>,
    return
  }
  func.func @transform_0(%arg0: i32) -> (i32, i32) {
    %c0_i32 = arith.constant 0 : i32
    %c0_i32_0 = arith.constant 0 : i32
    return %c0_i32, %arg0 : i32, i32
  }
  func.func @transform_1(%arg0: i32) -> (i32, i32) {
    %c0_i32 = arith.constant 0 : i32
    %c0_i32_0 = arith.constant 0 : i32
    %c0_i32_1 = arith.constant 0 : i32
    return %c0_i32, %c0_i32_0 : i32, i32
  }
  func.func @transform_2(%arg0: i32) -> (i32, i32) {
    %c0_i32 = arith.constant 0 : i32
    %c0_i32_0 = arith.constant 0 : i32
    %c0_i32_1 = arith.constant 0 : i32
    return %c0_i32, %c0_i32_0 : i32, i32
  }
  func.func @transform_3(%arg0: i32) -> (i32, i32) {
    %c0_i32 = arith.constant 0 : i32
    %c0_i32_0 = arith.constant 0 : i32
    %c0_i32_1 = arith.constant 0 : i32
    return %c0_i32, %c0_i32_0 : i32, i32
  }
  func.func @transform_4(%arg0: i32) -> (i32, i32) {
    %c0_i32 = arith.constant 0 : i32
    %c0_i32_0 = arith.constant 0 : i32
    %c0_i32_1 = arith.constant 0 : i32
    return %c0_i32, %c0_i32_0 : i32, i32
  }
  func.func @transform_5(%arg0: i32) -> (i32, i32) {
    %c0_i32 = arith.constant 0 : i32
    %c0_i32_0 = arith.constant 0 : i32
    %c0_i32_1 = arith.constant 0 : i32
    return %c0_i32, %c0_i32_0 : i32, i32
  }
  func.func @transform_6(%arg0: i32) -> (i32, i32) {
    %c0_i32 = arith.constant 0 : i32
    %c0_i32_0 = arith.constant 0 : i32
    %c0_i32_1 = arith.constant 0 : i32
    return %c0_i32, %c0_i32_0 : i32, i32
  }
  func.func @transform_7(%arg0: i32) -> (i32, i32) {
    %c0_i32 = arith.constant 0 : i32
    %c0_i32_0 = arith.constant 0 : i32
    return %c0_i32, %arg0 : i32, i32
  }
}

</mosaic_0001>

<bundles_post_ra>
// kernel: tpu_custom_call.1
= control target key start
LH: loop header
LB: loop body
LE: loop exit
PB: predicated region body
PF: predicated region fallthrough
CT: control target
= control target key end

     0   :  { %s554_s0 = inlined_call_operand.vmem [shape: f32[10,128], index: 0, kind: input, shape index: {}]   ;;  %s555_s1 = inlined_call_operand.vmem [shape: f32[32,10], index: 1, kind: input, shape index: {}]   ;;  %s556_s2 = inlined_call_operand.vmem [shape: f32[32,1], index: 2, kind: input, shape index: {}]   ;;  %s557_s3 = inlined_call_operand.vmem [shape: f32[16,32], index: 3, kind: input, shape index: {}]   ;;  %s558_s4 = inlined_call_operand.vmem [shape: f32[16,1], index: 4, kind: input, shape index: {}]   ;;  %s559_s5 = inlined_call_operand.vmem [shape: f32[1,16], index: 5, kind: input, shape index: {}]   ;;  %s560_s6 = inlined_call_operand.<no memory space> [shape: f32[1,1], index: 6, kind: input, shape index: {}]   ;;  %s561_s7 = inlined_call_operand.hbm [shape: f32[1,128], index: 7, kind: output, shape index: {}]  }
   0x1   :  { %v12_v0 = vstv %s560_s6 }
   0x2   :  { %13 = vst [vmem:[#allocation2] sm:$0x1] %v12_v0 }
   0x3   :  { %v30_v1 = vld [vmem:[%s554_s0 + $0x8] sm:$0x3]  ;;  %vm72_vm0 = vcmask 1041408   ;;  %v29_v2 = vld [vmem:[%s554_s0] sm:$0xff]  ;;  %vm59_vm1 = vcmask 80896   ;;  %v453_v5 = vmov 0  }
   0x4   :  { %v31_v3 = vld [vmem:[%s555_s1] sm:$0xff]  ;;  %393 = vmatprep.subr.msk.mxu0 %vm72_vm0, %v30_v1  ;;  %v32_v4 = vld [vmem:[%s555_s1 + $0x8] sm:$0xff]  ;;  %425 = vset.pattern.permute.xlu0 %v453_v5  ;;  %v38_v6 = vld [vmem:[%s556_s2 + $0x18] sm:$0xff] }
   0x5   :  { %397 = vmatprep.mubr.msk.f32.mxu0 %vm59_vm1, %v31_v3  ;;  %394 = vmatpush3.msk.msra.mxu0 %vm72_vm0, %v30_v1  ;;  %v33_v7 = vld [vmem:[%s555_s1 + $0x10] sm:$0xff]  ;;  %v36_v8 = vld [vmem:[%s556_s2 + $0x8] sm:$0xff] }
   0x6   :  { %395 = vmatprep.subr.mxu0 %v29_v2  ;;  %56 = vperm.xlu0 %425, %v38_v6   ;;  %v37_v9 = vld [vmem:[%s556_s2 + $0x10] sm:$0xff] }
   0x7   :  { %396 = vmatpush3.msra.mxu0 %v29_v2  ;;  %426 = vset.pattern.permute.xlu1 %v453_v5 }
   0x8   :  { %14 = vsyncpa [#allocation4], 0  ;;  %398 = vmatmul.mubr.msk.f32.vlgmr.msra.gmra.mxu0 %vm59_vm1, %v32_v4  ;;  %46 = vperm.xlu1 %426, %v36_v8   ;;  %v34_v10 = vld [vmem:[%s555_s1 + $0x18] sm:$0xff]  ;;  %v35_v11 = vld [vmem:[%s556_s2] sm:$0xff]  ;;  %vm179_vm2 = vcmask 261120   ;;  %v454_v33 = vmov 0.0   ;;  %v270_v43 = vlaneseq }
   0x9   :  { %400 = vmatprep.mubr.msk.f32.mxu0 %vm59_vm1, %v33_v7  ;;  %v168_v12 = vld [vmem:[%s558_s4 + $0x8] sm:$0xff]  ;;  %v167_v13 = vld [vmem:[%s558_s4] sm:$0xff]  ;;  %414 = vmatprep.subr.mxu0 %v454_v33  ;;  %vm455_vm3 = vmmov 0   ;;  %vm274_vm4 = vcmask 130048  }
   0xa   :  { %51 = vperm.xlu0 %425, %v37_v9   ;;  %v264_v14 = vld [vmem:[#allocation2] sm:$0x1]  ;;  %v166_v32 = vld [vmem:[%s557_s3 + $0x8] sm:$0xff]  ;;  %v271_v44 = vshrl.u32 %v270_v43, 7 }
   0xb   :  { %v165_v15 = vld [vmem:[%s557_s3] sm:$0xff]  ;;  %s456_s3 = smov [#allocation3]  }
   0xc   :  { %401 = vmatmul.mubr.msk.f32.gmra.mxu0 %vm59_vm1, %v34_v10  ;;  %41 = vperm.xlu1 %426, %v35_v11   ;;  %v263_v42 = vld [vmem:[%s559_s5] sm:$0x1]  ;;  %v272_v45 = vsub.s32 0, %v271_v44  ;;  %s361_s28 = sshll.u32 %s456_s3, 4  ;;  %s362_s28 = int_to_ptr.vmem [resolvable:$true] %s361_s28 }
   0xd   :  { %411 = vmatprep.mubr.msk.f32.mxu1 %vm179_vm2, %v165_v15  ;;  %418 = vmatprep.mubr.msk.f32.mxu0 %vm455_vm3, %v454_v33  ;;  %s431_s5 = scalar_lea.vmem %s362_s28, 16  ;;  %s435_s29 = scalar_lea.vmem %s362_s28, 32 }
   0xe   :  { %176 = vperm.xlu0 %425, %v168_v12   ;;  %p432_p0 = scmp.ne.s32.totalorder %s362_s28, %s431_s5  ;;  %p436_p1 = scmp.lt.s32.totalorder %s362_s28, %s362_s28 }
   0xf   :  { %p437_p2 = scmp.lt.s32.totalorder %s435_s29, %s431_s5 }
  0x10   :  { %171 = vperm.xlu1 %426, %v167_v13  }
  0x11   :  { %p438_p3 = por %p437_p2, %p436_p1 }
  0x12   :  { %267 = vperm.xlu0 %425, %v264_v14  }
  0x13   :  { %p439_p4 = pnand %p438_p3, %p432_p0 }
  0x81   :  { %v57_v16 = vpop.permute.xlu0 %56 }
  0x83   :  { %v47_v17 = vpop.permute.xlu1 %46 }
  0x85   :  { %v52_v21 = vpop.permute.xlu0 %51 }
  0x87   :  { %v42_v23 = vpop.permute.xlu1 %41 }
  0x89   :  { %v177_v34 = vpop.permute.xlu0 %176 }
  0x8b   :  { %v172_v37 = vpop.permute.xlu1 %171 }
  0x8d   :  { %v268_v46 = vpop.permute.xlu0 %267 }
  0x8e   :  { %v273_v47 = vrot.slane %v268_v46, %v272_v45 }
  0xc8   :  { %v399_v18 = vpop.f32.mrf.mxu0 }
  0xc9   :  { %v148_v25 = vadd.f32 %v399_v18, %v47_v17 }
  0xca   :  { %v142_v19 = vpop.f32.mrf.mxu0 }
  0xcb   :  { %v143_v28 = vadd.f32 %v142_v19, %v42_v23  ;;  %v162_v30 = vmax.f32 %v148_v25, 0.0 }
  0xcc   :  { %v402_v20 = vpop.f32.mrf.mxu0 }
  0xcd   :  { %v158_v22 = vadd.f32 %v402_v20, %v57_v16  ;;  %v161_v31 = vmax.f32 %v143_v28, 0.0 }
  0xce   :  { %v152_v24 = vpop.f32.mrf.mxu0 }
  0xcf   :  { %v164_v26 = vmax.f32 %v158_v22, 0.0  ;;  %v153_v27 = vadd.f32 %v152_v24, %v52_v21 }
  0xd1   :  { %v163_v29 = vmax.f32 %v153_v27, 0.0  ;;  %403 = vmatprep.subr.mxu1 %v164_v26 }
  0xd2   :  { %404 = vmatpush3.msra.mxu1 %v164_v26 }
  0xd3   :  { %405 = vmatprep.subr.mxu1 %v163_v29 }
  0xd4   :  { %406 = vmatpush3.msra.mxu1 %v163_v29 }
  0xd5   :  { %407 = vmatprep.subr.mxu1 %v162_v30 }
  0xd6   :  { %408 = vmatpush3.msra.mxu1 %v162_v30 }
  0xd7   :  { %409 = vmatprep.subr.mxu1 %v161_v31 }
  0xd8   :  { %410 = vmatpush3.msra.mxu1 %v161_v31 }
  0xd9   :  { %412 = vmatmul.mubr.msk.f32.vlgmr.msra.gmra.mxu1 %vm179_vm2, %v166_v32 }
 0x199   :  { %v413_v35 = vpop.f32.mrf.mxu1 }
 0x19a   :  { %v258_v36 = vadd.f32 %v413_v35, %v177_v34 }
 0x19b   :  { %v252_v38 = vpop.f32.mrf.mxu1 }
 0x19c   :  { %v262_v39 = vmax.f32 %v258_v36, 0.0  ;;  %v253_v40 = vadd.f32 %v252_v38, %v172_v37 }
 0x19e   :  { %v261_v41 = vmax.f32 %v253_v40, 0.0  ;;  %415 = vmatpush3.msra.mxu0 %v262_v39 }
 0x19f   :  { %416 = vmatprep.subr.mxu0 %v454_v33 }
 0x1a0   :  { %417 = vmatpush3.msra.mxu0 %v261_v41 }
 0x1a1   :  { %419 = vmatmul.mubr.msk.f32.vlgmr.msra.gmra.mxu0 %vm274_vm4, %v263_v42 }
 0x261   :  { %v344_v48 = vpop.f32.mrf.mxu0 }
 0x262   :  { %v345_v49 = vadd.f32 %v344_v48, %v273_v47 }
 0x263   :  { %v420_v50 = vpop.f32.mrf.mxu0 }
 0x264   :  { %v377_v51 = vmul.f32 -1.442695, %v345_v49 }
 0x266   :  { %427 = vpow2.f32 %v377_v51 }
 0x273   :  { %v428_v52 = vpop.eup %427 }
 0x274   :  { %v351_v53 = vadd.f32 1.0, %v428_v52 }
 0x276   :  { %429 = vrcp.f32 %v351_v53 }
 0x283   :  { %v430_v54 = vpop.eup %429 }
 0x284   :  { %354 = vst [vmem:[#allocation3] sm:$0x1] %v430_v54 }
 0x285   :  { %442 = shalt.err (!%p439_p4)
}
 0x286   :  { %364 = dma.vmem_to_hbm [thread:$0]  %s362_s28, 16, %s561_s7, [#allocation4]  }
 0x287   :  { %451 = dma.done.wait [#allocation4], 16  }
 0x288   :  { %452 = vsyncadd [#allocation4], 4294967280 }
 0x289   :  { %368 = vsyncpa [#allocation4], 1 }

</bundles_post_ra>
